<compile_context>
chip_gen: v6e
topology: v6e:2x2x1
jax: 0.10.0
libtpu: 0.0.40
codegen_flags: <defaults>
</compile_context>

<pallas_src>
import functools

import jax
import jax.numpy as jnp
from jax.experimental import pallas as pl
from jax.experimental.pallas import tpu as pltpu


def _temporal_pool_kernel(x_ref, o_ref, *, mode, ratio, m, inv_ratio):
    """x_ref: (rows, ratio*m), o_ref: (rows, m).

    Pools over `ratio` lane-tile-aligned column slices of width m.
    """
    if mode == 'max':
        # Reduce in the native dtype: no upcast, minimal vreg/VMEM pressure.
        acc = x_ref[:, 0:m]
        for k in range(1, ratio):
            acc = jnp.maximum(acc, x_ref[:, k * m:(k + 1) * m])
        o_ref[...] = acc
    else:  # 'mean' (module default)
        # Slice-wise f32 accumulation: only one live f32 copy of the block.
        # TODO(synk): integer input dtypes would truncate here (torch.mean
        # rejects ints, so not a practical concern).
        acc = x_ref[:, 0:m].astype(jnp.float32)
        for k in range(1, ratio):
            acc = acc + x_ref[:, k * m:(k + 1) * m].astype(jnp.float32)
        o_ref[...] = (acc * inv_ratio).astype(o_ref.dtype)


def _sublane_tile(dtype):
    size = jnp.dtype(dtype).itemsize
    return {4: 8, 2: 16, 1: 32}.get(size, 8)


def temporal_pooling(x, mode='mean', ratio=2):
    """x: (B, T, H, W) -> (B, T // ratio, H, W), pooling groups of `ratio`
    consecutive temporal frames (mean or max)."""
    B, T, H, W = x.shape
    assert T % ratio == 0, "temporal dim must be divisible by ratio"
    Tout = T // ratio
    M = H * W
    R = B * Tout                                  # independent output rows
    dtype = x.dtype
    itemsize = jnp.dtype(dtype).itemsize
    sub = _sublane_tile(dtype)

    # ---- 2-D re-layout: (R, ratio*Mp) -> (R, Mp), lane-dense everywhere ----
    # Pad M to a multiple of 128 so each column slice sits on lane-tile
    # boundaries and the output store is unmasked.  (No-op when M % 128 == 0.)
    Mp = ((M + 127) // 128) * 128
    x3 = x.reshape(R, ratio, M)
    if Mp != M:
        x3 = jnp.pad(x3, ((0, 0), (0, 0), (0, Mp - M)))
    x2 = x3.reshape(R, ratio * Mp)

    # ---- Row-block size from a per-generation VMEM budget ------------------
    try:
        vmem_cap = int(pltpu.get_tpu_info().vmem_capacity_bytes)
    except Exception:
        vmem_cap = 64 << 20                       # conservative (v7x-sized)
    # ~2 MiB real input data / block on 128-MiB-VMEM chips, ~1 MiB on v7x.
    budget = (2 << 20) if vmem_cap >= (100 << 20) else (1 << 20)

    bytes_per_row_in = ratio * Mp * itemsize
    rows_budget = max(sub, (budget // bytes_per_row_in) // sub * sub)

    # Keep >= min_steps grid steps (when the input is big enough) so the
    # pipeline has depth and an even split across v7x's two TensorCores.
    min_steps = 8
    rows_target = -(-R // min_steps)              # cdiv
    rows_target = max(sub, ((rows_target + sub - 1) // sub) * sub)

    rows_per_block = min(rows_budget, rows_target)
    if R <= rows_per_block:
        rows_per_block = R                        # single full-extent block
    grid = (pl.cdiv(R, rows_per_block),)

    in_block_bytes = rows_per_block * ratio * Mp * itemsize
    out_block_bytes = rows_per_block * Mp * itemsize
    vmem_limit = int(min(max(4 * (in_block_bytes + out_block_bytes), 8 << 20),
                         32 << 20))

    kernel = functools.partial(_temporal_pool_kernel, mode=mode, ratio=ratio,
                               m=Mp, inv_ratio=1.0 / float(ratio))

    out2 = pl.pallas_call(
        kernel,
        out_shape=jax.ShapeDtypeStruct((R, Mp), dtype),
        grid=grid,
        in_specs=[pl.BlockSpec((rows_per_block, ratio * Mp), lambda r: (r, 0))],
        out_specs=pl.BlockSpec((rows_per_block, Mp), lambda r: (r, 0)),
        compiler_params=pltpu.CompilerParams(
            dimension_semantics=("parallel",),
            vmem_limit_bytes=vmem_limit),
        cost_estimate=pl.CostEstimate(
            flops=int(R * (ratio - 1) * M),
            transcendentals=0,
            bytes_accessed=int(R * (ratio + 1) * M * itemsize)),
    )(x2)

    out = out2[:, :M] if Mp != M else out2
    return out.reshape(B, Tout, H, W)


def _reference(x, mode='mean', ratio=2):
    B, T, H, W = x.shape
    xr = x.astype(jnp.float32).reshape(B, T // ratio, ratio, H, W)
    y = xr.max(axis=2) if mode == 'max' else xr.mean(axis=2)
    return y.astype(x.dtype)


if __name__ == "__main__":
    # Small shapes consistent with the module: batch=2, temporal=4, 16x16 maps
    B, T, H, W = 2, 4, 16, 16
    ratio = 2

    key = jax.random.PRNGKey(0)
    x = jax.random.normal(key, (B, T, H, W), dtype=jnp.float32)

    for mode in ('mean', 'max'):
        out = jax.block_until_ready(temporal_pooling(x, mode=mode, ratio=ratio))
        ref = _reference(x, mode=mode, ratio=ratio)
        assert out.shape == (B, T // ratio, H, W)
        assert jnp.allclose(out, ref, atol=1e-5, rtol=1e-5), f"mismatch ({mode})"

    # bf16 path (native-dtype max, f32-accumulated mean)
    x_bf = x.astype(jnp.bfloat16)
    for mode in ('mean', 'max'):
        out = jax.block_until_ready(temporal_pooling(x_bf, mode=mode,
                                                     ratio=ratio))
        ref = _reference(x_bf, mode=mode, ratio=ratio)
        assert out.dtype == jnp.bfloat16
        assert jnp.allclose(out.astype(jnp.float32), ref.astype(jnp.float32),
                            atol=2e-2, rtol=2e-2), f"bf16 mismatch ({mode})"

    print("KERNEL_OK")
</pallas_src>

<mosaic_0001>
module attributes {stable_mosaic.version = 11 : i64} {
  func.func @_temporal_pool_kernel(%arg0: i32, %arg1: memref<4x512xf32, #tpu.memory_space<vmem>>, %arg2: memref<4x256xf32, #tpu.memory_space<vmem>>) attributes {dimension_semantics = [#tpu.dimension_semantics<parallel>], iteration_bounds = array<i64: 1>, scalar_prefetch = 0 : i64, scratch_operands = 0 : i64, tpu.core_type = #tpu.core_type<tc>, window_params = [{transform_indices = @transform_0, window_bounds = array<i64: 4, 512>}, {transform_indices = @transform_1, window_bounds = array<i64: 4, 256>}]} {
    %c0 = arith.constant 0 : index
    %c0_0 = arith.constant 0 : index
    %0 = vector.load %arg1[%c0, %c0_0] : memref<4x512xf32, #tpu.memory_space<vmem>>, vector<4x256xf32>
    %c0_1 = arith.constant 0 : index
    %c256 = arith.constant 256 : index
    %1 = vector.load %arg1[%c0_1, %c256] : memref<4x512xf32, #tpu.memory_space<vmem>>, vector<4x256xf32>
    %2 = arith.addf %0, %1 : vector<4x256xf32>
    %cst = arith.constant 5.000000e-01 : f32
    %3 = vector.broadcast %cst : f32 to vector<4x256xf32>
    %4 = arith.mulf %2, %3 : vector<4x256xf32>
    %c0_2 = arith.constant 0 : index
    %c0_3 = arith.constant 0 : index
    %5 = vector.load %arg2[%c0_2, %c0_3] : memref<4x256xf32, #tpu.memory_space<vmem>>, vector<4x256xf32>
    tpu.vector_store %arg2[%c0_2, %c0_3], %4 {strides = array<i32>} : memref<4x256xf32, #tpu.memory_space<vmem>>, vector<4x256xf32>,
    return
  }
  func.func @transform_0(%arg0: i32) -> (i32, i32) {
    %c0_i32 = arith.constant 0 : i32
    %c0_i32_0 = arith.constant 0 : i32
    return %arg0, %c0_i32 : i32, i32
  }
  func.func @transform_1(%arg0: i32) -> (i32, i32) {
    %c0_i32 = arith.constant 0 : i32
    %c0_i32_0 = arith.constant 0 : i32
    return %arg0, %c0_i32 : i32, i32
  }
}

</mosaic_0001>

<bundles_post_ra>
// kernel: tpu_custom_call.1
= control target key start
LH: loop header
LB: loop body
LE: loop exit
PB: predicated region body
PF: predicated region fallthrough
CT: control target
= control target key end

     0   :  { %6 = vsyncpa [#allocation3], 0  ;;  %s105_s0 = inlined_call_operand.hbm [shape: f32[4,512], index: 0, kind: input, shape index: {}]   ;;  %s106_s1 = inlined_call_operand.hbm [shape: f32[4,256], index: 1, kind: output, shape index: {}]  }
   0x1   :  { %7 = vsyncpa [#allocation4], 0  ;;  %s87_s6 = smov [#allocation2]  }
   0x2   :  { %s14_s7 = sshll.u32 %s87_s6, 4  ;;  %s15_s7 = int_to_ptr.vmem [resolvable:$true] %s14_s7 }
   0x3   :  { %s51_s8 = scalar_lea.vmem %s15_s7, 256  ;;  %p56_p1 = scmp.lt.s32.totalorder %s15_s7, %s15_s7 }
   0x4   :  { %p52_p0 = scmp.ne.s32.totalorder %s15_s7, %s51_s8  ;;  %p57_p2 = scmp.lt.s32.totalorder %s51_s8, %s51_s8 }
   0x6   :  { %p58_p3 = por %p57_p2, %p56_p1 }
   0x8   :  { %p59_p4 = pnand %p58_p3, %p52_p0 }
   0xa   :  { %62 = shalt.err (!%p59_p4)
}
   0xb   :  { %17 = dma.hbm_to_vmem [thread:$0]  %s105_s0, 256, %s15_s7, [#allocation3]  }
   0xc   :  { %83 = dma.done.wait [#allocation3], 256  }
   0xd   :  { %84 = vsyncadd [#allocation3], 4294967040  ;;  %v21_v0 = vld [vmem:[#allocation2] sm:$0xff]  ;;  %v22_v1 = vld [vmem:[#allocation2 + $0x8] sm:$0xff]  ;;  %s88_s11 = smov [#allocation5]  }
   0xe   :  { %s32_s12 = sshll.u32 %s88_s11, 4  ;;  %v23_v2 = vadd.f32 %v22_v1, %v21_v0  ;;  %s33_s12 = int_to_ptr.vmem [resolvable:$true] %s32_s12 }
   0xf   :  { %s63_s13 = scalar_lea.vmem %s33_s12, 128  ;;  %p68_p6 = scmp.lt.s32.totalorder %s33_s12, %s33_s12 }
  0x10   :  { %v24_v3 = vmul.f32 0.5, %v23_v2  ;;  %p64_p5 = scmp.ne.s32.totalorder %s33_s12, %s63_s13  ;;  %p69_p7 = scmp.lt.s32.totalorder %s63_s13, %s63_s13 }
  0x12   :  { %25 = vst [vmem:[#allocation5] sm:$0xff] %v24_v3  ;;  %p70_p8 = por %p69_p7, %p68_p6 }
  0x14   :  { %p71_p9 = pnand %p70_p8, %p64_p5 }
  0x16   :  { %74 = shalt.err (!%p71_p9)
}
  0x17   :  { %35 = dma.vmem_to_hbm [thread:$0]  %s33_s12, 128, %s106_s1, [#allocation4]  }
  0x18   :  { %85 = dma.done.wait [#allocation4], 128  }
  0x19   :  { %86 = vsyncadd [#allocation4], 4294967168 }
  0x1a   :  { %39 = vsyncpa [#allocation3], 1 }
  0x1b   :  { %40 = vsyncpa [#allocation4], 1 }

</bundles_post_ra>
